<compile_context>
chip_gen: v7x
topology: tpu7x:2x2x1
jax: 0.10.0
libtpu: 0.0.40
codegen_flags: <defaults>
</compile_context>

<pallas_src>
import functools
import math

import jax
import jax.numpy as jnp
import numpy as np
from jax.experimental import pallas as pl
from jax.experimental.pallas import tpu as pltpu


# ----------------------------------------------------------------------------
# Hardware-adaptive budgets
# ----------------------------------------------------------------------------
def _detect_vmem_capacity():
    try:
        info = pltpu.get_tpu_info()
        cap = getattr(info, "vmem_capacity_bytes", None)
        if cap:
            return int(cap)
    except Exception:
        pass
    return 64 * 1024 * 1024          # conservative default (v7x per-core VMEM)


_VMEM_CAP = _detect_vmem_capacity()
# v5e/v6e (128 MiB physical) -> 64 MiB scoped limit; v7x (64 MiB) -> 32 MiB.
_VMEM_LIMIT = min(_VMEM_CAP // 2, 64 * 1024 * 1024)
# Per-block budget for the spatially tiled kernels (x4: in/out double buffers).
_TILE_BUDGET = (3 * 1024 * 1024 if _VMEM_CAP <= 64 * 1024 * 1024
                else 10 * 1024 * 1024)


def _round_up(x, m):
    return (x + m - 1) // m * m


def _pick_spatial_tile(S, T, C, itemsize, batch):
    """Largest lane-dense (multiple-of-128) tile of the padded H*W axis within
    the per-block VMEM budget. S must already be a multiple of 128."""
    max_ts = max(128, (_TILE_BUDGET // max(1, T * C * itemsize)) // 128 * 128)
    ts = min(S, 2048, max_ts)
    ts = max(128, ts // 128 * 128)
    while S % ts != 0:
        ts -= 128
    # Prefer >= 2 grid steps so v7x's second TensorCore gets work.
    if batch * (S // ts) < 2 and ts > 128:
        ts = max(128, (ts // 2) // 128 * 128)
        while S % ts != 0:
            ts -= 128
    return ts


# ----------------------------------------------------------------------------
# VectorAtt kernel: weights = softmax_t( w @ x_t ), out = weights * x
# block layout: (1, T, C, tS) with the spatial axis on lanes.
# C-reduction runs on the MXU (one (1,C)@(C,tS) matmul per timestep).
# ----------------------------------------------------------------------------
def _vector_att_kernel(x_ref, w_ref, o_ref, *, n_time):
    w_row = w_ref[...].astype(jnp.float32)                              # (1, C)
    rows = [jnp.dot(w_row, x_ref[0, t],
                    preferred_element_type=jnp.float32)                 # (1, tS)
            for t in range(n_time)]
    m = functools.reduce(jnp.maximum, rows)                             # (1, tS)
    es = [jnp.exp(r - m) for r in rows]                                 # EUP
    inv = 1.0 / functools.reduce(jnp.add, es)                           # exact
    for t in range(n_time):
        o_ref[0, t] = (x_ref[0, t] * (es[t] * inv)).astype(o_ref.dtype)


# ----------------------------------------------------------------------------
# TemporalAtt kernel: attn = softmax_t( w_s2(tanh(w_s1(x))) ), out = attn * x
# Both projections run on the MXU; no cross-sublane reduce, no concat.
# ----------------------------------------------------------------------------
def _temporal_att_kernel(x_ref, w1_ref, w2_ref, o_ref, *, n_time, r):
    w1 = w1_ref[...]                                                    # (d, C)
    w2 = w2_ref[...]                                                    # (r, d)
    rows = []
    for t in range(n_time):
        xt = x_ref[0, t]                                                # (C, tS)
        z1 = jnp.tanh(jnp.dot(w1, xt, preferred_element_type=jnp.float32))
        rows.append(jnp.dot(w2, z1, preferred_element_type=jnp.float32))  # (r, tS)
    # TODO(synk): torch's elementwise multiply only broadcasts for r in {1, C};
    # other r values are not representable with the original module semantics.
    m = functools.reduce(jnp.maximum, rows)
    es = [jnp.exp(l - m) for l in rows]
    inv = 1.0 / functools.reduce(jnp.add, es)
    for t in range(n_time):
        o_ref[0, t] = (x_ref[0, t] * (es[t] * inv)).astype(o_ref.dtype)


def _timewise_att_call(x_btcs, kernel, weight_args, weight_specs):
    B, T, C, S = x_btcs.shape
    s_pad = _round_up(S, 128)
    if s_pad != S:
        # Per-pixel op: padded columns are garbage and sliced off afterwards.
        x_btcs = jnp.pad(x_btcs, ((0, 0), (0, 0), (0, 0), (0, s_pad - S)))
    ts = _pick_spatial_tile(s_pad, T, C, x_btcs.dtype.itemsize, B)
    blk = (1, T, C, ts)
    out = pl.pallas_call(
        kernel,
        out_shape=jax.ShapeDtypeStruct((B, T, C, s_pad), x_btcs.dtype),
        grid=(B, s_pad // ts),
        in_specs=[pl.BlockSpec(blk, lambda b, s: (b, 0, 0, s))] + weight_specs,
        out_specs=pl.BlockSpec(blk, lambda b, s: (b, 0, 0, s)),
        compiler_params=pltpu.CompilerParams(
            dimension_semantics=("parallel", "parallel"),
            vmem_limit_bytes=_VMEM_LIMIT),
    )(x_btcs, *weight_args)
    if s_pad != S:
        out = out[..., :S]
    return out


def _vector_att_call(x_btcs, w_lin):
    C = x_btcs.shape[2]
    kernel = functools.partial(_vector_att_kernel, n_time=x_btcs.shape[1])
    return _timewise_att_call(
        x_btcs, kernel, (w_lin,),
        [pl.BlockSpec((1, C), lambda b, s: (0, 0))])


def _temporal_att_call(x_btcs, w_s1, w_s2):
    C = x_btcs.shape[2]
    d, r = w_s1.shape[0], w_s2.shape[0]
    kernel = functools.partial(_temporal_att_kernel, n_time=x_btcs.shape[1], r=r)
    return _timewise_att_call(
        x_btcs, kernel, (w_s1, w_s2),
        [pl.BlockSpec((d, C), lambda b, s: (0, 0)),
         pl.BlockSpec((r, d), lambda b, s: (0, 0))])


# ----------------------------------------------------------------------------
# SelfAtt: flash-style attention over the flattened (B*T*H*W) rows.
# Q/K/V precomputed once with a single fused projection matmul (scale folded
# into w_q).  Grid = (q tiles [parallel], k tiles [arbitrary]); online softmax
# in VMEM scratch; key padding handled with a precomputed additive bias row.
# ----------------------------------------------------------------------------
def _flash_attn_kernel(q_ref, k_ref, v_ref, bias_ref, o_ref,
                       m_sc, l_sc, acc_sc, *, tk, kv_resident, need_mask):
    j = pl.program_id(1)

    @pl.when(j == 0)
    def _():
        m_sc[...] = jnp.full_like(m_sc, -1e30)
        l_sc[...] = jnp.zeros_like(l_sc)
        acc_sc[...] = jnp.zeros_like(acc_sc)

    q = q_ref[...]                                   # native dtype into the MXU
    if kv_resident:
        start = pl.multiple_of(j * tk, tk)
        k = k_ref[pl.ds(start, tk), :]
        v = v_ref[pl.ds(start, tk), :]
    else:
        k = k_ref[...]
        v = v_ref[...]

    s = jax.lax.dot_general(q, k, (((1,), (1,)), ((), ())),
                            preferred_element_type=jnp.float32)  # (tq, tk), f32 acc
    if need_mask:
        s = s + bias_ref[...]                        # (1, tk) additive key bias

    m_prev = m_sc[...]
    m_new = jnp.maximum(m_prev, jnp.max(s, axis=-1, keepdims=True))
    alpha = jnp.exp(m_prev - m_new)
    p = jnp.exp(s - m_new)
    l_sc[...] = alpha * l_sc[...] + jnp.sum(p, axis=-1, keepdims=True)
    acc_sc[...] = alpha * acc_sc[...] + jnp.dot(
        p.astype(v.dtype), v, preferred_element_type=jnp.float32)
    m_sc[...] = m_new

    @pl.when(j == pl.num_programs(1) - 1)
    def _():
        o_ref[...] = (acc_sc[...] * (1.0 / l_sc[...])).astype(o_ref.dtype)


def _self_att_tiles(N):
    tk = 128 if N <= 128 else 256
    n_pad_k = _round_up(N, tk)
    tq = 512
    # Shrink tq until there are >= 2 q tiles (v7x megacore) without over-padding.
    while tq > 128 and _round_up(N, tq) < 2 * tq:
        tq //= 2
    n_pad_q = _round_up(N, tq)
    return tq, tk, n_pad_q, n_pad_k


def _self_att_call(x_nc, w_q, w_k, w_v, dk, dv, force_resident=None):
    N, C = x_nc.shape
    scale = 1.0 / math.sqrt(dk)
    # Single fused [Q|K|V] projection; 1/sqrt(dk) folded into the Q weights so
    # the kernel never scales s per step.
    w_cat = jnp.concatenate(
        [jnp.transpose(w_q) * scale, jnp.transpose(w_k), jnp.transpose(w_v)],
        axis=1)
    qkv = jnp.dot(x_nc, w_cat, preferred_element_type=jnp.float32).astype(x_nc.dtype)
    q, k, v = qkv[:, :dk], qkv[:, dk:2 * dk], qkv[:, 2 * dk:]

    tq, tk, n_pad_q, n_pad_k = _self_att_tiles(N)
    if n_pad_q != N:
        q = jnp.pad(q, ((0, n_pad_q - N), (0, 0)))
    if n_pad_k != N:
        k = jnp.pad(k, ((0, n_pad_k - N), (0, 0)))
        v = jnp.pad(v, ((0, n_pad_k - N), (0, 0)))
    need_mask = n_pad_k != N
    bias = jnp.where(jnp.arange(n_pad_k) < N, 0.0, -1e30
                     ).astype(jnp.float32).reshape(1, n_pad_k)

    # Fully VMEM-resident K/V when they fit comfortably (DMA'd exactly once);
    # otherwise stream (tk, d) blocks per key step.
    kv_bytes = n_pad_k * (dk + dv) * q.dtype.itemsize
    kv_resident = kv_bytes <= _VMEM_LIMIT // 4
    if force_resident is not None:
        kv_resident = force_resident

    if kv_resident:
        k_spec = pl.BlockSpec((n_pad_k, dk), lambda i, j: (0, 0))
        v_spec = pl.BlockSpec((n_pad_k, dv), lambda i, j: (0, 0))
    else:
        k_spec = pl.BlockSpec((tk, dk), lambda i, j: (j, 0))
        v_spec = pl.BlockSpec((tk, dv), lambda i, j: (j, 0))

    kernel = functools.partial(_flash_attn_kernel, tk=tk,
                               kv_resident=kv_resident, need_mask=need_mask)
    out = pl.pallas_call(
        kernel,
        out_shape=jax.ShapeDtypeStruct((n_pad_q, dv), x_nc.dtype),
        grid=(n_pad_q // tq, n_pad_k // tk),
        in_specs=[pl.BlockSpec((tq, dk), lambda i, j: (i, 0)),
                  k_spec, v_spec,
                  pl.BlockSpec((1, tk), lambda i, j: (0, j))],
        out_specs=pl.BlockSpec((tq, dv), lambda i, j: (i, 0)),
        scratch_shapes=[pltpu.VMEM((tq, 1), jnp.float32),
                        pltpu.VMEM((tq, 1), jnp.float32),
                        pltpu.VMEM((tq, dv), jnp.float32)],
        compiler_params=pltpu.CompilerParams(
            dimension_semantics=("parallel", "arbitrary"),
            vmem_limit_bytes=_VMEM_LIMIT),
    )(q, k, v, bias)
    return out[:N]


# ----------------------------------------------------------------------------
# ApplyAtt wrapper (parameter setup + layout glue in plain JAX)
# ----------------------------------------------------------------------------
class ApplyAtt:
    def __init__(self, attn_type, hidden_dim_size, attn_dims, key=None):
        self.attn_type = attn_type
        c = hidden_dim_size
        if attn_type == 'vector':
            self.w = jnp.ones((1, c), jnp.float32)                 # nn.init.constant_(1)
        elif attn_type == 'temporal':
            d, r = attn_dims['d'], attn_dims['r']
            self.w_s1 = jnp.ones((d, c), jnp.float32)              # nn.init.constant_(1)
            self.w_s2 = jnp.ones((r, d), jnp.float32)              # nn.init.constant_(1)
        elif attn_type == 'self':
            dk, dv = attn_dims['dk'], attn_dims['dv']
            self.dk, self.dv = dk, dv
            bound = 1.0 / math.sqrt(c)                             # torch Linear default init
            if key is None:
                key = jax.random.PRNGKey(0)
            k1, k2, k3 = jax.random.split(key, 3)
            self.w_q = jax.random.uniform(k1, (dk, c), jnp.float32, -bound, bound)
            self.w_k = jax.random.uniform(k2, (dk, c), jnp.float32, -bound, bound)
            self.w_v = jax.random.uniform(k3, (dv, c), jnp.float32, -bound, bound)
        elif attn_type == 'None':
            pass
        else:
            raise ValueError('Specified attention type is not compatible')

    def __call__(self, hidden_states):          # hidden_states: (B, T, C, H, W)
        if self.attn_type == 'None':
            return None
        B, T, C, H, W = hidden_states.shape
        if self.attn_type == 'self':
            x = jnp.transpose(hidden_states, (0, 1, 3, 4, 2)).reshape(-1, C)
            out = _self_att_call(x, self.w_q, self.w_k, self.w_v, self.dk, self.dv)
            out = out.reshape(B, T, H, W, self.dv)
            return jnp.transpose(out, (0, 1, 4, 2, 3))
        # vector / temporal: lane-dense native layout (B, T, C, H*W) — no transposes.
        x = hidden_states.reshape(B, T, C, H * W)
        if self.attn_type == 'vector':
            out = _vector_att_call(x, self.w)
        else:
            out = _temporal_att_call(x, self.w_s1, self.w_s2)
        return out.reshape(B, T, C, H, W)
        # TODO(synk): VectorAtt's `lengths` masking path is dead code in the
        # original (ApplyAtt never passes lengths and the torch loop is a no-op).


# ----------------------------------------------------------------------------
# Pure-numpy references (sanity checks)
# ----------------------------------------------------------------------------
def _np_softmax(x, axis):
    m = np.max(x, axis=axis, keepdims=True)
    e = np.exp(x - m)
    return e / np.sum(e, axis=axis, keepdims=True)


def _ref_vector(x5, w):
    hp = np.transpose(np.asarray(x5), (0, 1, 3, 4, 2))
    weights = _np_softmax(hp @ np.asarray(w).T, axis=1)
    return np.transpose(weights * hp, (0, 1, 4, 2, 3))


def _ref_temporal(x5, w1, w2):
    hp = np.transpose(np.asarray(x5), (0, 1, 3, 4, 2))
    z1 = np.tanh(hp @ np.asarray(w1).T)
    attn = _np_softmax(z1 @ np.asarray(w2).T, axis=1)
    return np.transpose(attn * hp, (0, 1, 4, 2, 3))


def _ref_self(x5, wq, wk, wv, dk):
    x5 = np.asarray(x5)
    B, T, C, H, W = x5.shape
    hp = np.transpose(x5, (0, 1, 3, 4, 2)).reshape(-1, C)
    q = hp @ np.asarray(wq).T
    k = hp @ np.asarray(wk).T
    v = hp @ np.asarray(wv).T
    p = _np_softmax((q @ k.T) / math.sqrt(dk), axis=1)
    out = (p @ v).reshape(B, T, H, W, -1)
    return np.transpose(out, (0, 1, 4, 2, 3))


if __name__ == "__main__":
    key = jax.random.PRNGKey(0)
    k_x, k_x2, k_p, k_p2 = jax.random.split(key, 4)
    B, T, C, H, W = 2, 4, 32, 8, 8
    x = jax.random.normal(k_x, (B, T, C, H, W), jnp.float32)

    # vector attention (H*W = 64 exercises the pad-to-128 path)
    mod_v = ApplyAtt('vector', C, {})
    out_v = jax.block_until_ready(mod_v(x))
    np.testing.assert_allclose(np.asarray(out_v), _ref_vector(x, mod_v.w),
                               rtol=2e-3, atol=2e-3)
    assert out_v.shape == (B, T, C, H, W)

    # temporal attention
    mod_t = ApplyAtt('temporal', C, {'d': 16, 'r': 1})
    out_t = jax.block_until_ready(mod_t(x))
    np.testing.assert_allclose(np.asarray(out_t),
                               _ref_temporal(x, mod_t.w_s1, mod_t.w_s2),
                               rtol=2e-3, atol=2e-3)
    assert out_t.shape == (B, T, C, H, W)

    # self attention (N=512: resident-K/V path, 2 q tiles x 2 k tiles)
    mod_s = ApplyAtt('self', C, {'dk': 32, 'dv': 32}, key=k_p)
    out_s = jax.block_until_ready(mod_s(x))
    ref_s = _ref_self(x, mod_s.w_q, mod_s.w_k, mod_s.w_v, 32)
    np.testing.assert_allclose(np.asarray(out_s), ref_s, rtol=2e-3, atol=2e-3)
    assert out_s.shape == (B, T, 32, H, W)

    # same weights, forced streamed-K/V path (exercises the (tk, d) BlockSpecs)
    x_flat = jnp.transpose(x, (0, 1, 3, 4, 2)).reshape(-1, C)
    out_stream = jax.block_until_ready(
        _self_att_call(x_flat, mod_s.w_q, mod_s.w_k, mod_s.w_v,
                       mod_s.dk, mod_s.dv, force_resident=False))
    ref_flat = np.transpose(ref_s, (0, 1, 3, 4, 2)).reshape(-1, mod_s.dv)
    np.testing.assert_allclose(np.asarray(out_stream), ref_flat,
                               rtol=2e-3, atol=2e-3)

    # self attention with ragged N (N=147: padding + additive key-bias masking)
    x2 = jax.random.normal(k_x2, (1, 3, C, 7, 7), jnp.float32)
    mod_s2 = ApplyAtt('self', C, {'dk': 16, 'dv': 24}, key=k_p2)
    out_s2 = jax.block_until_ready(mod_s2(x2))
    np.testing.assert_allclose(np.asarray(out_s2),
                               _ref_self(x2, mod_s2.w_q, mod_s2.w_k, mod_s2.w_v, 16),
                               rtol=2e-3, atol=2e-3)
    assert out_s2.shape == (1, 3, 24, 7, 7)

    # attn_type == 'None'
    assert ApplyAtt('None', C, {})(x) is None

    print("KERNEL_OK")
</pallas_src>

<mosaic_0001>
module attributes {stable_mosaic.version = 11 : i64} {
  func.func @_vector_att_kernel(%arg0: i32, %arg1: i32, %arg2: memref<1x4x32x128xf32, #tpu.memory_space<vmem>>, %arg3: memref<1x32xf32, #tpu.memory_space<vmem>>, %arg4: memref<1x4x32x128xf32, #tpu.memory_space<vmem>>) attributes {dimension_semantics = [#tpu.dimension_semantics<parallel>, #tpu.dimension_semantics<parallel>], iteration_bounds = array<i64: 2, 1>, scalar_prefetch = 0 : i64, scratch_operands = 0 : i64, tpu.core_type = #tpu.core_type<tc>, window_params = [{transform_indices = @transform_0, window_bounds = array<i64: 1, 4, 32, 128>}, {pipeline_mode = #tpu.pipeline_mode<synchronous>, transform_indices = @transform_1, window_bounds = array<i64: 1, 32>}, {transform_indices = @transform_2, window_bounds = array<i64: 1, 4, 32, 128>}]} {
    %c0 = arith.constant 0 : index
    %c0_0 = arith.constant 0 : index
    %0 = vector.load %arg3[%c0, %c0_0] : memref<1x32xf32, #tpu.memory_space<vmem>>, vector<1x32xf32>
    %c0_1 = arith.constant 0 : index
    %c0_2 = arith.constant 0 : index
    %c0_3 = arith.constant 0 : index
    %c0_4 = arith.constant 0 : index
    %1 = vector.load %arg2[%c0_1, %c0_2, %c0_3, %c0_4] : memref<1x4x32x128xf32, #tpu.memory_space<vmem>>, vector<1x1x32x128xf32>
    %2 = vector.shape_cast %1 : vector<1x1x32x128xf32> to vector<32x128xf32>
    %cst = arith.constant dense<0.000000e+00> : vector<1x128xf32>
    %3 = tpu.matmul %0, %2, %cst {dimension_numbers = #tpu.dot_dimension_numbers<[1], [0], [0], [1], [0, 0, 1, 1], [], []>} : vector<1x32xf32>, vector<32x128xf32>, vector<1x128xf32> -> vector<1x128xf32>
    %c0_5 = arith.constant 0 : index
    %c1 = arith.constant 1 : index
    %c0_6 = arith.constant 0 : index
    %c0_7 = arith.constant 0 : index
    %4 = vector.load %arg2[%c0_5, %c1, %c0_6, %c0_7] : memref<1x4x32x128xf32, #tpu.memory_space<vmem>>, vector<1x1x32x128xf32>
    %5 = vector.shape_cast %4 : vector<1x1x32x128xf32> to vector<32x128xf32>
    %cst_8 = arith.constant dense<0.000000e+00> : vector<1x128xf32>
    %6 = tpu.matmul %0, %5, %cst_8 {dimension_numbers = #tpu.dot_dimension_numbers<[1], [0], [0], [1], [0, 0, 1, 1], [], []>} : vector<1x32xf32>, vector<32x128xf32>, vector<1x128xf32> -> vector<1x128xf32>
    %c0_9 = arith.constant 0 : index
    %c2 = arith.constant 2 : index
    %c0_10 = arith.constant 0 : index
    %c0_11 = arith.constant 0 : index
    %7 = vector.load %arg2[%c0_9, %c2, %c0_10, %c0_11] : memref<1x4x32x128xf32, #tpu.memory_space<vmem>>, vector<1x1x32x128xf32>
    %8 = vector.shape_cast %7 : vector<1x1x32x128xf32> to vector<32x128xf32>
    %cst_12 = arith.constant dense<0.000000e+00> : vector<1x128xf32>
    %9 = tpu.matmul %0, %8, %cst_12 {dimension_numbers = #tpu.dot_dimension_numbers<[1], [0], [0], [1], [0, 0, 1, 1], [], []>} : vector<1x32xf32>, vector<32x128xf32>, vector<1x128xf32> -> vector<1x128xf32>
    %c0_13 = arith.constant 0 : index
    %c3 = arith.constant 3 : index
    %c0_14 = arith.constant 0 : index
    %c0_15 = arith.constant 0 : index
    %10 = vector.load %arg2[%c0_13, %c3, %c0_14, %c0_15] : memref<1x4x32x128xf32, #tpu.memory_space<vmem>>, vector<1x1x32x128xf32>
    %11 = vector.shape_cast %10 : vector<1x1x32x128xf32> to vector<32x128xf32>
    %cst_16 = arith.constant dense<0.000000e+00> : vector<1x128xf32>
    %12 = tpu.matmul %0, %11, %cst_16 {dimension_numbers = #tpu.dot_dimension_numbers<[1], [0], [0], [1], [0, 0, 1, 1], [], []>} : vector<1x32xf32>, vector<32x128xf32>, vector<1x128xf32> -> vector<1x128xf32>
    %13 = arith.maximumf %3, %6 : vector<1x128xf32>
    %14 = arith.maximumf %13, %9 : vector<1x128xf32>
    %15 = arith.maximumf %14, %12 : vector<1x128xf32>
    %16 = arith.subf %3, %15 : vector<1x128xf32>
    %17 = math.exp %16 : vector<1x128xf32>
    %18 = arith.subf %6, %15 : vector<1x128xf32>
    %19 = math.exp %18 : vector<1x128xf32>
    %20 = arith.subf %9, %15 : vector<1x128xf32>
    %21 = math.exp %20 : vector<1x128xf32>
    %22 = arith.subf %12, %15 : vector<1x128xf32>
    %23 = math.exp %22 : vector<1x128xf32>
    %24 = arith.addf %17, %19 : vector<1x128xf32>
    %25 = arith.addf %24, %21 : vector<1x128xf32>
    %26 = arith.addf %25, %23 : vector<1x128xf32>
    %cst_17 = arith.constant 1.000000e+00 : f32
    %27 = vector.broadcast %cst_17 : f32 to vector<1x128xf32>
    %28 = arith.divf %27, %26 : vector<1x128xf32>
    %c0_18 = arith.constant 0 : index
    %c0_19 = arith.constant 0 : index
    %c0_20 = arith.constant 0 : index
    %c0_21 = arith.constant 0 : index
    %29 = vector.load %arg2[%c0_18, %c0_19, %c0_20, %c0_21] : memref<1x4x32x128xf32, #tpu.memory_space<vmem>>, vector<1x1x32x128xf32>
    %30 = vector.shape_cast %29 : vector<1x1x32x128xf32> to vector<32x128xf32>
    %31 = arith.mulf %17, %28 : vector<1x128xf32>
    %32 = vector.broadcast %31 : vector<1x128xf32> to vector<32x128xf32>
    %33 = arith.mulf %30, %32 : vector<32x128xf32>
    %c0_22 = arith.constant 0 : index
    %c0_23 = arith.constant 0 : index
    %c0_24 = arith.constant 0 : index
    %c0_25 = arith.constant 0 : index
    %34 = vector.load %arg4[%c0_22, %c0_23, %c0_24, %c0_25] : memref<1x4x32x128xf32, #tpu.memory_space<vmem>>, vector<1x1x32x128xf32>
    %35 = vector.shape_cast %34 : vector<1x1x32x128xf32> to vector<32x128xf32>
    %36 = vector.shape_cast %33 : vector<32x128xf32> to vector<1x1x32x128xf32>
    tpu.vector_store %arg4[%c0_22, %c0_23, %c0_24, %c0_25], %36 {strides = array<i32>} : memref<1x4x32x128xf32, #tpu.memory_space<vmem>>, vector<1x1x32x128xf32>,
    %c0_26 = arith.constant 0 : index
    %c1_27 = arith.constant 1 : index
    %c0_28 = arith.constant 0 : index
    %c0_29 = arith.constant 0 : index
    %37 = vector.load %arg2[%c0_26, %c1_27, %c0_28, %c0_29] : memref<1x4x32x128xf32, #tpu.memory_space<vmem>>, vector<1x1x32x128xf32>
    %38 = vector.shape_cast %37 : vector<1x1x32x128xf32> to vector<32x128xf32>
    %39 = arith.mulf %19, %28 : vector<1x128xf32>
    %40 = vector.broadcast %39 : vector<1x128xf32> to vector<32x128xf32>
    %41 = arith.mulf %38, %40 : vector<32x128xf32>
    %c0_30 = arith.constant 0 : index
    %c1_31 = arith.constant 1 : index
    %c0_32 = arith.constant 0 : index
    %c0_33 = arith.constant 0 : index
    %42 = vector.load %arg4[%c0_30, %c1_31, %c0_32, %c0_33] : memref<1x4x32x128xf32, #tpu.memory_space<vmem>>, vector<1x1x32x128xf32>
    %43 = vector.shape_cast %42 : vector<1x1x32x128xf32> to vector<32x128xf32>
    %44 = vector.shape_cast %41 : vector<32x128xf32> to vector<1x1x32x128xf32>
    tpu.vector_store %arg4[%c0_30, %c1_31, %c0_32, %c0_33], %44 {strides = array<i32>} : memref<1x4x32x128xf32, #tpu.memory_space<vmem>>, vector<1x1x32x128xf32>,
    %c0_34 = arith.constant 0 : index
    %c2_35 = arith.constant 2 : index
    %c0_36 = arith.constant 0 : index
    %c0_37 = arith.constant 0 : index
    %45 = vector.load %arg2[%c0_34, %c2_35, %c0_36, %c0_37] : memref<1x4x32x128xf32, #tpu.memory_space<vmem>>, vector<1x1x32x128xf32>
    %46 = vector.shape_cast %45 : vector<1x1x32x128xf32> to vector<32x128xf32>
    %47 = arith.mulf %21, %28 : vector<1x128xf32>
    %48 = vector.broadcast %47 : vector<1x128xf32> to vector<32x128xf32>
    %49 = arith.mulf %46, %48 : vector<32x128xf32>
    %c0_38 = arith.constant 0 : index
    %c2_39 = arith.constant 2 : index
    %c0_40 = arith.constant 0 : index
    %c0_41 = arith.constant 0 : index
    %50 = vector.load %arg4[%c0_38, %c2_39, %c0_40, %c0_41] : memref<1x4x32x128xf32, #tpu.memory_space<vmem>>, vector<1x1x32x128xf32>
    %51 = vector.shape_cast %50 : vector<1x1x32x128xf32> to vector<32x128xf32>
    %52 = vector.shape_cast %49 : vector<32x128xf32> to vector<1x1x32x128xf32>
    tpu.vector_store %arg4[%c0_38, %c2_39, %c0_40, %c0_41], %52 {strides = array<i32>} : memref<1x4x32x128xf32, #tpu.memory_space<vmem>>, vector<1x1x32x128xf32>,
    %c0_42 = arith.constant 0 : index
    %c3_43 = arith.constant 3 : index
    %c0_44 = arith.constant 0 : index
    %c0_45 = arith.constant 0 : index
    %53 = vector.load %arg2[%c0_42, %c3_43, %c0_44, %c0_45] : memref<1x4x32x128xf32, #tpu.memory_space<vmem>>, vector<1x1x32x128xf32>
    %54 = vector.shape_cast %53 : vector<1x1x32x128xf32> to vector<32x128xf32>
    %55 = arith.mulf %23, %28 : vector<1x128xf32>
    %56 = vector.broadcast %55 : vector<1x128xf32> to vector<32x128xf32>
    %57 = arith.mulf %54, %56 : vector<32x128xf32>
    %c0_46 = arith.constant 0 : index
    %c3_47 = arith.constant 3 : index
    %c0_48 = arith.constant 0 : index
    %c0_49 = arith.constant 0 : index
    %58 = vector.load %arg4[%c0_46, %c3_47, %c0_48, %c0_49] : memref<1x4x32x128xf32, #tpu.memory_space<vmem>>, vector<1x1x32x128xf32>
    %59 = vector.shape_cast %58 : vector<1x1x32x128xf32> to vector<32x128xf32>
    %60 = vector.shape_cast %57 : vector<32x128xf32> to vector<1x1x32x128xf32>
    tpu.vector_store %arg4[%c0_46, %c3_47, %c0_48, %c0_49], %60 {strides = array<i32>} : memref<1x4x32x128xf32, #tpu.memory_space<vmem>>, vector<1x1x32x128xf32>,
    return
  }
  func.func @transform_0(%arg0: i32, %arg1: i32) -> (i32, i32, i32, i32) {
    %c0_i32 = arith.constant 0 : i32
    %c0_i32_0 = arith.constant 0 : i32
    %c0_i32_1 = arith.constant 0 : i32
    return %arg0, %c0_i32, %c0_i32_0, %arg1 : i32, i32, i32, i32
  }
  func.func @transform_1(%arg0: i32, %arg1: i32) -> (i32, i32) {
    %c0_i32 = arith.constant 0 : i32
    %c0_i32_0 = arith.constant 0 : i32
    %c0_i32_1 = arith.constant 0 : i32
    return %c0_i32, %c0_i32_0 : i32, i32
  }
  func.func @transform_2(%arg0: i32, %arg1: i32) -> (i32, i32, i32, i32) {
    %c0_i32 = arith.constant 0 : i32
    %c0_i32_0 = arith.constant 0 : i32
    %c0_i32_1 = arith.constant 0 : i32
    return %arg0, %c0_i32, %c0_i32_0, %arg1 : i32, i32, i32, i32
  }
}

</mosaic_0001>

<bundles_post_ra>
// kernel: tpu_custom_call.1
= control target key start
LH: loop header
LB: loop body
LE: loop exit
PB: predicated region body
PF: predicated region fallthrough
CT: control target
= control target key end

     0   :  { %7 = vsyncpa [#allocation3], 0  ;;  %s1323_s0 = inlined_call_operand.hbm [shape: f32[2,4,32,128], index: 0, kind: input, shape index: {}]   ;;  %s1324_s1 = inlined_call_operand.vmem [shape: f32[1,32], index: 1, kind: input, shape index: {}]   ;;  %s1325_s2 = inlined_call_operand.hbm [shape: f32[2,4,32,128], index: 2, kind: output, shape index: {}]  }
   0x1   :  { %9 = vsyncpa [#allocation3 + $0x1], 0 }
   0x2   :  { %10 = vsyncpa [#allocation4], 0 }
   0x3   :  { %12 = vsyncpa [#allocation4 + $0x1], 0  ;;  %s1032_s9 = smov 0   ;;  %s1034_s10 = smov 0  }
   0x4   :  { %s1036_s11 = smov 0   ;;  %s1038_s12 = smov 0  }
   0x5   :  { %s1040_s13 = smov 0   ;;  %s1042_s14 = smov 0  }
   0x6 LB: > { %s670_s15 = sadd.s32 4294967295, %s1006_s14   ;;  %s671_s16 = sadd.s32 4294967294, %s1006_s14   ;;  %s1006_s14 = sphi %s1042_s14, %s18_s14   ;;  %s1002_s13 = sphi %s1040_s13, %s1340_s13   ;;  %s998_s12 = sphi %s1038_s12, %s1339_s12   ;;  %s994_s11 = sphi %s1036_s11, %s1338_s11   ;;  %s990_s10 = sphi %s1034_s10, %s1337_s10   ;;  %s986_s9 = sphi %s1032_s9, %s1336_s9  }
   0x7   : > { %s30_s17 = sadd.s32 1, %s1002_s13  ;;  %s39_s18 = sadd.s32 1, %s994_s11 }
   0x8   : > { %p32_p0 = scmp.ge.s32.totalorder %s30_s17, 2  ;;  %p46_p1 = scmp.ne.s32.totalorder %s994_s11, %s990_s10 }
   0x9   : > { %p47_p2 = scmp.eq.s32.totalorder %s1006_s14, 0  ;;  %p52_p3 = scmp.ne.s32.totalorder %s990_s10, %s986_s9 }
   0xa   : > { %s1342_s17 = smov (%p32_p0, %s30_s17), 0  ;;  %p53_p5 = scmp.eq.s32.totalorder %s670_s15, 0 }
   0xb   : > { %p1073_p4 = por %p47_p2, %p46_p1  ;;  %s34_s20 = ssub.s32 %s1002_s13, %s1342_s17 }
   0xc   : > { %p99_p6 = scmp.eq.s32.totalorder %s670_s15, 1  ;;  %p37_p7 = scmp.eq.s32.totalorder %s34_s20, 0 }
   0xd   : > { %p1079_p8 = por %p53_p5, %p52_p3  ;;  %p105_p10 = scmp.eq.s32.totalorder %s671_s16, 1 }
   0xe   : > { %p1083_p9 = por %p99_p6, %p46_p1  ;;  %p827_p13 = scmp.lt.s32.totalorder %s1006_s14, 2 }
   0xf   : > { %s1088_s23 = scalar_select %p37_p7, %s994_s11, %s39_s18  }
  0x10   : > { %s1329_s22 = scalar_select %p1083_p9, 1, 0 }
  0x11   : > { %p1090_p11 = por %p105_p10, %p52_p3  ;;  %s128_s25 = sand.u32 1, %s994_s11  }
  0x12   : > { %s674_s26 = sshll.u32 %s128_s25, 7  ;;  %s725_s27 = sshll.u32 %s1002_s13, 11 }
  0x13   : > { %s1330_s24 = scalar_select %p1090_p11, 1, 0 }
  0x14   : > { %s1101_s30 = scalar_lea.hbm %s1323_s0, %s725_s27  ;;  %s132_s3 = scalar_lea.vmem [#allocation2], %s674_s26 }
  0x15   : > { %s140_s4 = sshll.u32 %s132_s3, 4  ;;  %p1107_p0 = pnand %p827_p13, %p1073_p4  ;;  %s1103_s4 = int_to_ptr.vmem [resolvable:$true] %s140_s4 }
  0x16   : > { %s1112_s6 = scalar_lea.sflag [#allocation3], %s128_s25  ;;  %s894_s7 = scalar_lea.hbm %s1101_s30, 2048 }
  0x17   : > { %p895_p2 = scmp.ne.s32.totalorder %s1101_s30, %s894_s7  ;;  %p896_p3 = pneg %p1107_p0 }
  0x18   : > { %s899_s16 = scalar_lea.hbm %s1323_s0, 4096  ;;  %p900_p4 = scmp.lt.u32.totalorder %s1101_s30, %s1323_s0 }
  0x19   : > { %p897_p5 = pnand %p896_p3, %p895_p2  ;;  %p901_p7 = scmp.lt.u32.totalorder %s899_s16, %s894_s7 }
  0x1a   : > { %p903_p13 = scmp.lt.u32.totalorder %s894_s7, %s1101_s30 }
  0x1b   : > { %p898_p6 = pneg %p897_p5  ;;  %p902_p10 = por %p901_p7, %p900_p4 }
  0x1d   : > { %p904_p12 = por %p903_p13, %p902_p10 }
  0x1f   : > { %p905_p1 = pnand %p904_p12, %p898_p6 }
  0x21   : > { %908 = shalt.err (!%p905_p1)
}
  0x22   : > { %s909_s20 = scalar_lea.vmem %s1103_s4, 2048  ;;  %s1008_s25 = smov [#allocation2]  }
  0x23   : > { %p910_p2 = scmp.ne.s32.totalorder %s1103_s4, %s909_s20  ;;  %s914_s26 = sshll.u32 %s1008_s25, 4  ;;  %s915_s26 = int_to_ptr.vmem [resolvable:$false] %s914_s26 }
  0x24   : > { %s916_s27 = scalar_lea.vmem %s915_s26, 4096  ;;  %p917_p9 = scmp.lt.s32.totalorder %s1103_s4, %s915_s26 }
  0x25   : > { %p912_p5 = pnand %p910_p2, %p896_p3  ;;  %p918_p4 = scmp.lt.s32.totalorder %s916_s27, %s909_s20 }
  0x27   : > { %p913_p11 = pneg %p912_p5  ;;  %p919_p7 = por %p918_p4, %p917_p9 }
  0x29   : > { %p920_p10 = pnand %p919_p7, %p913_p11 }
  0x2b   : > { %923 = shalt.err (!%p920_p10)
}
  0x2c   : > { %s1009_s28 = smov 128   ;;  %s1010_s29 = smov 8  }
  0x2d   : > { %822 = dma.hbm_to_vmem [thread:$0]  (!%p1107_p0), %s1101_s30, 2048, %s1103_s4, %s1112_s6, %s1009_s28, %s1009_s28, %s1010_s29  }
  0x2e   : > { %p148_p12 = scmp.lt.s32.totalorder %s1006_s14, 3  ;;  %p1332_p1 = scmp.ge.s32.totalorder %s1006_s14, 1 }
  0x30   : > { %p149_p3 = pnand %p1332_p1, %p148_p12 }
  0x31   : > { %s1144_s3 = sand.u32 (!%p149_p3), 1, %s990_s10  }
  0x32   : > { %152 = sbr.rel (%p149_p3) target bundleno = 353 (0x161), region = 28  ;;  %s678_s7 = sshll.u32 (!%p149_p3), %s1144_s3, 7 }
  0x33   : > { %s155_s8 = scalar_lea.sflag (!%p149_p3), [#allocation3], %s1144_s3  ;;  %s1150_s15 = scalar_lea.vmem (!%p149_p3), [#allocation2], %s678_s7 }
  0x39   : > { %977 = dma.done.wait (%p1079_p8), %s155_s8, 2048  }
  0x3a   : > { %979 = vsyncadd (%p1079_p8), %s155_s8, 4294965248  ;;  %v1011_v0 = vmov 0.0|0.0   ;;  %vm1012_vm0 = vmmov 0   ;;  %v1013_v1 = vmov 0.0   ;;  %v1159_v2 = vld [vmem:[%s1150_s15] sm:$0xff]  ;;  %v1162_v3 = vld [vmem:[%s1150_s15 + $0x8] sm:$0xff]  ;;  %v504_v53 = vlaneseq }
  0x3b   : > { %791 = vmatprep.subr.bf16.mxu0 %v1011_v0  ;;  %797 = vmatprep.subr.bf16.mxu1 %v1011_v0  ;;  %v1165_v4 = vld [vmem:[%s1150_s15 + $0x20] sm:$0xff]  ;;  %v792_v5 = vpack.c.bf16 %v1162_v3, %v1159_v2  ;;  %v1170_v6 = vld [vmem:[%s1150_s15 + $0x28] sm:$0xff]  ;;  %v1173_v7 = vld [vmem:[%s1150_s15 + $0x10] sm:$0xff]  ;;  %vm184_vm1 = vcmask 261120   ;;  %s726_s4 = sshll.u32 %s998_s12, 11  ;;  %s1234_s5 = scalar_lea.vmem [#allocation5], %s678_s7 }
  0x3c   : > { %755 = vmatprep.mubr.msk.f32.mxu0 %vm1012_vm0, %v1013_v1  ;;  %766 = vmatprep.mubr.msk.f32.mxu1 %vm1012_vm0, %v1013_v1  ;;  %v1176_v8 = vld [vmem:[%s1150_s15 + $0x18] sm:$0xff]  ;;  %v798_v9 = vpack.c.bf16 %v1170_v6, %v1165_v4  ;;  %v1181_v10 = vld [vmem:[%s1150_s15 + $0x30] sm:$0xff]  ;;  %v1191_v14 = vld [vmem:[%s1150_s15 + $0x40] sm:$0xff]  ;;  %v505_v54 = vshrl.u32 %v504_v53, 7  ;;  %s585_s6 = sshll.u32 %s1234_s5, 4  ;;  %s1256_s18 = scalar_lea.hbm %s1325_s2, %s726_s4  ;;  %s1258_s6 = int_to_ptr.vmem [resolvable:$true] %s585_s6 }
  0x3d   : > { %v1184_v11 = vld [vmem:[%s1150_s15 + $0x38] sm:$0xff]  ;;  %793 = vmatpush3.bf16.msra.mxu0 %v792_v5  ;;  %v795_v12 = vpack.c.bf16 %v1176_v8, %v1173_v7  ;;  %v1194_v15 = vld [vmem:[%s1150_s15 + $0x48] sm:$0xff]  ;;  %v1197_v16 = vld [vmem:[%s1150_s15 + $0x60] sm:$0xff]  ;;  %s571_s19 = scalar_lea.sflag [#allocation4], %s1144_s3  ;;  %s924_s20 = scalar_lea.vmem %s1258_s6, 2048 }
  0x3e   : > { %799 = vmatpush3.bf16.msra.mxu1 %v798_v9  ;;  %794 = vmatprep.subr.bf16.mxu0 %v1011_v0  ;;  %v801_v13 = vpack.c.bf16 %v1184_v11, %v1181_v10  ;;  %v1200_v17 = vld [vmem:[%s1150_s15 + $0x68] sm:$0xff]  ;;  %v179_v18 = vld [vmem:[%s1324_s1] sm:$0x1]  ;;  %v804_v19 = vpack.c.bf16 %v1194_v15, %v1191_v14  ;;  %v1210_v21 = vld [vmem:[%s1150_s15 + $0x50] sm:$0xff]  ;;  %v506_v55 = vsub.s32 0, %v505_v54  ;;  %p925_p8 = scmp.ne.s32.totalorder %s1258_s6, %s924_s20  ;;  %p1333_p9 = scmp.ne.s32.totalorder %s1329_s22, 0 }
  0x3f   : > { %800 = vmatprep.subr.bf16.mxu1 %v1011_v0  ;;  %v810_v20 = vpack.c.bf16 %v1200_v17, %v1197_v16  ;;  %v1213_v22 = vld [vmem:[%s1150_s15 + $0x58] sm:$0xff]  ;;  %v1216_v23 = vld [vmem:[%s1150_s15 + $0x70] sm:$0xff]  ;;  %s1014_s25 = smov [#allocation5]  }
  0x40   : > { %v1219_v24 = vld [vmem:[%s1150_s15 + $0x78] sm:$0xff]  ;;  %v807_v25 = vpack.c.bf16 %v1213_v22, %v1210_v21  ;;  %p926_p11 = pnand %p925_p8, %p1333_p9  ;;  %s928_s26 = sshll.u32 %s1014_s25, 4  ;;  %s929_s26 = int_to_ptr.vmem [resolvable:$false] %s928_s26 }
  0x41   : > { %796 = vmatpush3.bf16.msra.mxu0 %v795_v12  ;;  %v813_v26 = vpack.c.bf16 %v1219_v24, %v1216_v23  ;;  %s930_s27 = scalar_lea.vmem %s929_s26, 4096  ;;  %p931_p6 = scmp.lt.s32.totalorder %s1258_s6, %s929_s26 }
  0x42   : > { %802 = vmatpush3.bf16.msra.mxu1 %v801_v13  ;;  %803 = vmatprep.subr.bf16.mxu0 %v1011_v0  ;;  %p927_p0 = pneg %p926_p11  ;;  %p932_p13 = scmp.lt.s32.totalorder %s930_s27, %s924_s20 }
  0x43   : > { %809 = vmatprep.subr.bf16.mxu1 %v1011_v0 }
  0x44   : > { %756 = vmatmul.mubr.msk.f32.vlgmr.msra.gmra.mrb[0].mxu0 %vm184_vm1, %v179_v18  ;;  %p933_p2 = por %p932_p13, %p931_p6 }
  0x45   : > { %767 = vmatmul.mubr.msk.f32.vlgmr.msra.gmra.mrb[0].mxu1 %vm184_vm1, %v179_v18  ;;  %805 = vmatpush3.bf16.msra.mxu0 %v804_v19 }
  0x46   : > { %811 = vmatpush3.bf16.msra.mxu1 %v810_v20  ;;  %806 = vmatprep.subr.bf16.mxu0 %v1011_v0  ;;  %p934_p5 = pnand %p933_p2, %p927_p0 }
  0x47   : > { %812 = vmatprep.subr.bf16.mxu1 %v1011_v0  ;;  %777 = vmatprep.mubr.msk.f32.mxu0 %vm1012_vm0, %v1013_v1 }
  0x48   : > { %788 = vmatprep.mubr.msk.f32.mxu1 %vm1012_vm0, %v1013_v1 }
  0x49   : > { %808 = vmatpush3.bf16.msra.mxu0 %v807_v25 }
  0x4a   : > { %814 = vmatpush3.bf16.msra.mxu1 %v813_v26 }
  0x4c   : > { %778 = vmatmul.mubr.msk.f32.vlgmr.msra.gmra.mrb[2].mxu0 %vm184_vm1, %v179_v18 }
  0x4d   : > { %789 = vmatmul.mubr.msk.f32.vlgmr.msra.gmra.mrb[2].mxu1 %vm184_vm1, %v179_v18 }
 0x117   : > { %v254_v27 = vpop.f32.mrb[0].mxu0 }
 0x118   : > { %v757_v28 = vpop.f32.mrb[1].mxu0  ;;  %v329_v29 = vpop.f32.mrb[0].mxu1 }
 0x119   : > { %v483_v30 = vmax.f32 %v254_v27, %v329_v29  ;;  %v768_v31 = vpop.f32.mrb[1].mxu1 }
 0x11f   : > { %v404_v32 = vpop.f32.mrb[2].mxu0 }
 0x120   : > { %v484_v33 = vmax.f32 %v483_v30, %v404_v32  ;;  %v779_v34 = vpop.f32.mrb[3].mxu0  ;;  %v479_v35 = vpop.f32.mrb[2].mxu1 }
 0x121   : > { %v790_v36 = vpop.f32.mrb[3].mxu1 }
 0x122   : > { %v485_v37 = vmax.f32 %v484_v33, %v479_v35 }
 0x124   : > { %v486_v38 = vsub.f32 %v254_v27, %v485_v37  ;;  %v489_v39 = vsub.f32 %v329_v29, %v485_v37  ;;  %v492_v40 = vsub.f32 %v404_v32, %v485_v37  ;;  %v495_v41 = vsub.f32 %v479_v35, %v485_v37 }
 0x126   : > { %v487_v42 = vmul.f32 1.442695, %v486_v38  ;;  %v490_v43 = vmul.f32 1.442695, %v489_v39  ;;  %v493_v44 = vmul.f32 1.442695, %v492_v40 }
 0x127   : > { %v496_v45 = vmul.f32 1.442695, %v495_v41 }
 0x128   : > { %884 = vpow2.f32 %v487_v42 }
 0x129   : > { %886 = vpow2.f32 %v490_v43 }
 0x12a   : > { %888 = vpow2.f32 %v493_v44 }
 0x12b   : > { %890 = vpow2.f32 %v496_v45 }
 0x132   : > { %v885_v46 = vpop.eup %884 }
 0x133   : > { %v887_v47 = vpop.eup %886 }
 0x134   : > { %v498_v48 = vadd.f32 %v887_v47, %v885_v46  ;;  %v889_v49 = vpop.eup %888 }
 0x135   : > { %v891_v51 = vpop.eup %890 }
 0x136   : > { %v499_v50 = vadd.f32 %v889_v49, %v498_v48 }
 0x138   : > { %v500_v52 = vadd.f32 %v891_v51, %v499_v50 }
 0x13a   : > { %892 = vrcp.f32 %v500_v52 }
 0x144   : > { %v893_v56 = vpop.eup %892 }
 0x145   : > { %v503_v57 = vmul.f32 %v893_v56, %v885_v46  ;;  %v520_v58 = vmul.f32 %v893_v56, %v887_v47  ;;  %v538_v59 = vmul.f32 %v893_v56, %v889_v49  ;;  %v556_v60 = vmul.f32 %v893_v56, %v891_v51 }
 0x147   : > { %v507_v61 = vrot.slane %v503_v57, %v506_v55  ;;  %v524_v62 = vrot.slane %v520_v58, %v506_v55  ;;  %v542_v63 = vrot.slane %v538_v59, %v506_v55  ;;  %v560_v0 = vrot.slane %v556_v60, %v506_v55 }
 0x149   : > { %v508_v1 = vmul.f32 %v507_v61, %v1159_v2  ;;  %v509_v5 = vmul.f32 %v507_v61, %v1162_v3  ;;  %v510_v9 = vmul.f32 %v507_v61, %v1173_v7  ;;  %v511_v12 = vmul.f32 %v507_v61, %v1176_v8 }
 0x14a   : > { %v525_v13 = vmul.f32 %v1165_v4, %v524_v62  ;;  %v526_v18 = vmul.f32 %v1170_v6, %v524_v62  ;;  %v527_v19 = vmul.f32 %v1181_v10, %v524_v62  ;;  %v528_v20 = vmul.f32 %v1184_v11, %v524_v62 }
 0x14b   : > { %512 = vst [vmem:[%s1234_s5] sm:$0xff] %v508_v1  ;;  %513 = vst [vmem:[%s1234_s5 + $0x8] sm:$0xff] %v509_v5  ;;  %v543_v2 = vmul.f32 %v1191_v14, %v542_v63  ;;  %v544_v3 = vmul.f32 %v1194_v15, %v542_v63  ;;  %v545_v4 = vmul.f32 %v1210_v21, %v542_v63 }
 0x14c   : > { %514 = vst [vmem:[%s1234_s5 + $0x10] sm:$0xff] %v510_v9  ;;  %515 = vst [vmem:[%s1234_s5 + $0x18] sm:$0xff] %v511_v12  ;;  %v546_v6 = vmul.f32 %v1213_v22, %v542_v63  ;;  %v561_v7 = vmul.f32 %v1197_v16, %v560_v0  ;;  %v562_v8 = vmul.f32 %v1200_v17, %v560_v0 }
 0x14d   : > { %700 = vst [vmem:[%s1234_s5 + $0x20] sm:$0xff] %v525_v13  ;;  %701 = vst [vmem:[%s1234_s5 + $0x28] sm:$0xff] %v526_v18  ;;  %v563_v10 = vmul.f32 %v1216_v23, %v560_v0  ;;  %v564_v11 = vmul.f32 %v1219_v24, %v560_v0 }
 0x14e   : > { %702 = vst [vmem:[%s1234_s5 + $0x30] sm:$0xff] %v527_v19  ;;  %703 = vst [vmem:[%s1234_s5 + $0x38] sm:$0xff] %v528_v20 }
 0x14f   : > { %708 = vst [vmem:[%s1234_s5 + $0x40] sm:$0xff] %v543_v2  ;;  %709 = vst [vmem:[%s1234_s5 + $0x48] sm:$0xff] %v544_v3 }
 0x150   : > { %710 = vst [vmem:[%s1234_s5 + $0x50] sm:$0xff] %v545_v4  ;;  %711 = vst [vmem:[%s1234_s5 + $0x58] sm:$0xff] %v546_v6 }
 0x151   : > { %716 = vst [vmem:[%s1234_s5 + $0x60] sm:$0xff] %v561_v7  ;;  %717 = vst [vmem:[%s1234_s5 + $0x68] sm:$0xff] %v562_v8 }
 0x152   : > { %718 = vst [vmem:[%s1234_s5 + $0x70] sm:$0xff] %v563_v10  ;;  %719 = vst [vmem:[%s1234_s5 + $0x78] sm:$0xff] %v564_v11 }
 0x153   : > { %937 = shalt.err (!%p934_p5)
}
 0x154   : > { %s938_s28 = scalar_lea.hbm %s1256_s18, 2048  ;;  %s942_s8 = scalar_lea.hbm %s1325_s2, 4096 }
 0x155   : > { %p939_p4 = scmp.ne.s32.totalorder %s1256_s18, %s938_s28  ;;  %p943_p12 = scmp.lt.u32.totalorder %s1256_s18, %s1325_s2 }
 0x156   : > { %p944_p1 = scmp.lt.u32.totalorder %s942_s8, %s938_s28  ;;  %p946_p8 = scmp.lt.u32.totalorder %s938_s28, %s1256_s18 }
 0x157   : > { %p940_p7 = pnand %p939_p4, %p1333_p9 }
 0x158   : > { %p945_p3 = por %p944_p1, %p943_p12 }
 0x159   : > { %p941_p10 = pneg %p940_p7 }
 0x15a   : > { %p947_p11 = por %p946_p8, %p945_p3 }
 0x15c   : > { %p948_p0 = pnand %p947_p11, %p941_p10 }
 0x15e   : > { %951 = shalt.err (!%p948_p0)
}
 0x15f   : > { %s1015_s30 = smov 128   ;;  %s1016_s4 = smov 8  }
 0x160   : > { %817 = dma.vmem_to_hbm [thread:$0]  (%p1333_p9), %s1258_s6, 2048, %s1256_s18, %s571_s19, %s1015_s30, %s1015_s30, %s1016_s4  }
 0x161 PF: > { %s600_s5 = sand.u32 1, %s986_s9   ;;  %p1334_p6 = scmp.ne.s32.totalorder %s1330_s24, 0 }
 0x162   : > { %p1335_p13 = scmp.ge.s32.totalorder %s1006_s14, 2  ;;  %s601_s12 = scalar_lea.sflag [#allocation4], %s600_s5 }
 0x164   : > { %p824_p2 = pnand %p1335_p13, %p1334_p6 }
 0x166   : > { %981 = dma.done.wait (!%p824_p2), %s601_s12, 2048  }
 0x167   : > { %983 = vsyncadd (!%p824_p2), %s601_s12, 4294965248  ;;  %s18_s14 = sadd.s32 1, %s1006_s14   ;;  %s1336_s9 = smov %s990_s10 }
 0x168   : > { %p15_p5 = scmp.ge.s32.totalorder %s18_s14, 4   ;;  %s1337_s10 = smov %s994_s11 }
 0x169   : > { %s1338_s11 = smov %s1088_s23  ;;  %s1339_s12 = smov %s1002_s13 }
 0x16a   : > { %s1340_s13 = smov %s1342_s17  ;;  %17 = sbr.rel (!%p15_p5) target bundleno = 6 (0x6), region = 79 }
 0x171   :  { %606 = vsyncpa [#allocation3], 1 }
 0x172   :  { %608 = vsyncpa [#allocation3 + $0x1], 1 }
 0x173   :  { %609 = vsyncpa [#allocation4], 1 }
 0x174   :  { %611 = vsyncpa [#allocation4 + $0x1], 1 }

</bundles_post_ra>
